<compile_context>
chip_gen: v6e
topology: v6e:2x2x1
jax: 0.10.0
libtpu: 0.0.40
codegen_flags: <defaults>
</compile_context>

<pallas_src>
import functools

import jax
import jax.numpy as jnp
import numpy as np
from jax import lax
from jax.experimental import pallas as pl
from jax.experimental.pallas import tpu as pltpu


def _round_up(x, m):
    return (x + m - 1) // m * m


def _cdiv(a, b):
    return (a + b - 1) // b


def _embedding_loss_kernel(proj_ref, emb_ref, lab2_ref, lab_row_ref,        # inputs
                           lse_ref, lab_ref, sum_ref, glob_ref,             # per-core outputs
                           l_sc,                                            # VMEM scratch
                           *, B, B_pad, C, TC, half, epsilon,
                           scale_pos, scale_neg, alpha, beta,
                           mask_classes, use_sum):
    p = pl.program_id(0)            # partial-result index ("parallel"; one per TC on v7x)
    c = pl.program_id(1)            # class-tile index within this core ("arbitrary")
    nc = pl.num_programs(1)
    B2 = 2 * B_pad

    tile_start = (p * half + c) * TC     # logical (unclamped) first class id of this tile

    @pl.when(c == 0)
    def _init():
        # lse_ref doubles as the running row-max during the class loop.
        # NOTE: the -1e30 sentinel is only safe because these buffers are f32.
        lse_ref[...] = jnp.full_like(lse_ref, -1e30)
        l_sc[...] = jnp.zeros_like(l_sc)
        lab_ref[...] = jnp.zeros_like(lab_ref)
        sum_ref[...] = jnp.zeros_like(sum_ref)
        glob_ref[...] = jnp.zeros_like(glob_ref)

    # ------------- global alignment loss (once: core 0, step 0) -------------
    # Computed at c == 0 so it overlaps the DMA of class tiles 1..n instead of
    # sitting serially after the last tile.
    @pl.when(jnp.logical_and(p == 0, c == 0))
    def _global_align():
        emb32 = emb_ref[...].astype(jnp.float32)
        vis = emb32[:B_pad]
        txt = emb32[B_pad:]
        vis_n = vis * lax.rsqrt(jnp.maximum(jnp.sum(vis * vis, axis=1, keepdims=True), 1e-24))
        txt_n = txt * lax.rsqrt(jnp.maximum(jnp.sum(txt * txt, axis=1, keepdims=True), 1e-24))
        # sim[i, j] = <vis_n[i], txt_n[j]>  (contract feature dim, no transpose)
        sim = lax.dot_general(vis_n, txt_n, (((1,), (1,)), ((), ())),
                              preferred_element_type=jnp.float32)            # [B_pad, B_pad]
        lab_col = lab2_ref[...][:B_pad]                                      # [B_pad, 1]
        lab_row = lab_row_ref[...]                                           # [1, B_pad]
        valid_i = lax.broadcasted_iota(jnp.int32, (B_pad, 1), 0) < B
        valid_j = lax.broadcasted_iota(jnp.int32, (1, B_pad), 1) < B
        pair_valid = jnp.logical_and(valid_i, valid_j)
        pos = jnp.logical_and(lab_col == lab_row, pair_valid)
        # one fused, numerically-stable softplus per element (branch via the pos mask)
        arg = jnp.where(pos, -scale_pos * (sim - alpha), scale_neg * (sim - beta))
        sp = jnp.maximum(arg, 0.0) + jnp.log1p(jnp.exp(-jnp.abs(arg)))
        glob_ref[...] = jnp.sum(jnp.where(pair_valid, sp, 0.0), keepdims=True) * (2.0 / B)

    # ----------- instance loss: online logsumexp over class tiles -----------
    proj = proj_ref[...]                                                     # [D, TC] native dtype
    projf = proj.astype(jnp.float32)
    # F.normalize(proj, dim=0): apply the column inverse norm to the f32 logits AFTER
    # the MXU matmul (no [D, TC] rescale/cast passes; scale stays in f32).
    inv_norm = lax.rsqrt(jnp.maximum(jnp.sum(projf * projf, axis=0, keepdims=True), 1e-24))
    logits = jnp.dot(emb_ref[...], proj,
                     preferred_element_type=jnp.float32) * inv_norm          # [2B, TC] f32

    lab2 = lab2_ref[...]                                                     # [2B, 1] int32
    col = lax.broadcasted_iota(jnp.int32, (1, TC), 1)                        # local column ids
    if mask_classes:
        class_valid = col < (C - tile_start)                                 # [1, TC]
        slogits = jnp.where(class_valid, logits, -1e30)
    else:
        slogits = logits

    m_old = lse_ref[...]
    m_new = jnp.maximum(m_old, jnp.max(slogits, axis=-1, keepdims=True))
    l_sc[...] = (l_sc[...] * jnp.exp(m_old - m_new)
                 + jnp.sum(jnp.exp(slogits - m_new), axis=-1, keepdims=True))
    lse_ref[...] = m_new

    # gathered label logit (exactly one match over all tiles of all cores)
    lab_ref[...] += jnp.sum(jnp.where(col == (lab2 - tile_start), logits, 0.0),
                            axis=-1, keepdims=True)
    if use_sum:     # label smoothing: needs the sum over all real class logits
        contrib = jnp.where(class_valid, logits, 0.0) if mask_classes else logits
        sum_ref[...] += jnp.sum(contrib, axis=-1, keepdims=True)

    @pl.when(c == nc - 1)
    def _finalize():
        lse_ref[...] = lse_ref[...] + jnp.log(l_sc[...])                     # partial lse


def embedding_loss(projection, visual_embed, textual_embed, labels, *,
                   epsilon=0.0, scale_pos=10.0, scale_neg=40.0,
                   alpha=0.6, beta=0.4, class_tile=1024, num_cores=2):
    """Returns (instance_loss, global_align_loss) as f32 scalars."""
    B, D = visual_embed.shape
    assert textual_embed.shape == (B, D)
    Dp, C = projection.shape
    assert Dp == D

    B_pad = _round_up(B, 8)

    # Class dim: never materialize a copy padded up to the tile size.  Only pad to a
    # 128-lane multiple when C itself is ragged; when C % 128 == 0 (the common
    # large-scale case) there is no wrapper copy of the projection at all and the
    # ragged last tile is masked in-kernel instead.
    C_a = _round_up(C, 128)
    proj = projection if C_a == C else jnp.pad(projection, ((0, 0), (0, C_a - C)))

    proj_isz = jnp.dtype(projection.dtype).itemsize
    emb_isz = jnp.dtype(visual_embed.dtype).itemsize

    # Class tile: lane multiple (default 1024 is also 256-aligned for the v6e/v7x
    # MXU); shrink until the (double-buffered) working set fits the VMEM budget.
    TC = min(_round_up(class_tile, 128), C_a)

    def _need(tc):
        return (2 * D * tc * proj_isz            # double-buffered projection tile
                + 2 * D * tc * 4                 # f32 upcast + square temporaries
                + 6 * (2 * B_pad) * tc * 4       # logits + masking / exp temporaries
                + 2 * (2 * B_pad) * D * emb_isz  # resident stacked embeddings (2 bufs)
                + 4 * B_pad * B_pad * 4          # sim + softplus temporaries
                + (2 << 20))                     # slack
    budget = 40 << 20
    while TC > 128 and _need(TC) > budget:
        TC = max(_round_up(TC // 2, 128), 128)
    vmem_limit = int(min(max(2 * _need(TC), 16 << 20), 48 << 20))   # <= v7x 64 MiB / TC

    n_c = _cdiv(C_a, TC)                  # real class tiles
    P = num_cores if n_c >= 2 else 1      # leading "parallel" axis (one per TC on v7x)
    half = _cdiv(n_c, P)                  # class tiles per core
    clamp_tiles = (P * half != n_c)       # last core may get one duplicate, fully masked tile
    mask_classes = (P * half * TC != C)   # some tile contains column indices >= C

    vis = jnp.pad(visual_embed, ((0, B_pad - B), (0, 0)))
    txt = jnp.pad(textual_embed, ((0, B_pad - B), (0, 0)))
    emb = jnp.concatenate([vis, txt], axis=0)                             # [2*B_pad, D]

    lab = jnp.pad(labels.astype(jnp.int32), (0, B_pad - B), constant_values=-1)
    lab2 = jnp.concatenate([lab, lab]).reshape(2 * B_pad, 1)              # (vis ; txt) labels
    lab_row = lab.reshape(1, B_pad)

    if clamp_tiles:
        # The duplicate logical tile re-reads the last real tile; its class ids are
        # all >= C so it contributes exactly zero (its logical index drives the mask).
        proj_map = lambda p, c: (0, jnp.minimum(p * half + c, n_c - 1))
    else:
        proj_map = lambda p, c: (0, p * half + c)

    kernel = functools.partial(
        _embedding_loss_kernel,
        B=B, B_pad=B_pad, C=C, TC=TC, half=half,
        epsilon=float(epsilon), scale_pos=float(scale_pos),
        scale_neg=float(scale_neg), alpha=float(alpha), beta=float(beta),
        mask_classes=mask_classes, use_sum=(float(epsilon) != 0.0))

    classes_proc = P * half * TC
    cost = pl.CostEstimate(
        flops=2 * (2 * B_pad) * D * classes_proc + 2 * B_pad * B_pad * D + 2 * D * C_a,
        transcendentals=(2 * B_pad) * classes_proc + C_a + 2 * B_pad * B_pad,
        bytes_accessed=(D * C_a * proj_isz + 2 * B_pad * D * emb_isz
                        + 4 * P * (2 * B_pad + 1) * 4))

    lse_p, lab_p, sum_p, glob_p = pl.pallas_call(
        kernel,
        out_shape=(jax.ShapeDtypeStruct((P, 2 * B_pad, 1), jnp.float32),   # per-core lse
                   jax.ShapeDtypeStruct((P, 2 * B_pad, 1), jnp.float32),   # label logits
                   jax.ShapeDtypeStruct((P, 2 * B_pad, 1), jnp.float32),   # sum of logits
                   jax.ShapeDtypeStruct((P, 1, 1), jnp.float32)),          # global align
        grid_spec=pltpu.PrefetchScalarGridSpec(
            num_scalar_prefetch=0,
            grid=(P, half),
            in_specs=[
                pl.BlockSpec((D, TC), proj_map),                    # streamed proj tile
                pl.BlockSpec((2 * B_pad, D), lambda p, c: (0, 0)),  # stacked embeds (resident)
                pl.BlockSpec((2 * B_pad, 1), lambda p, c: (0, 0)),  # labels column (vis;txt)
                pl.BlockSpec((1, B_pad), lambda p, c: (0, 0)),      # labels row
            ],
            out_specs=(pl.BlockSpec((None, 2 * B_pad, 1), lambda p, c: (p, 0, 0)),
                       pl.BlockSpec((None, 2 * B_pad, 1), lambda p, c: (p, 0, 0)),
                       pl.BlockSpec((None, 2 * B_pad, 1), lambda p, c: (p, 0, 0)),
                       pl.BlockSpec((None, 1, 1), lambda p, c: (p, 0, 0))),
            scratch_shapes=[pltpu.VMEM((2 * B_pad, 1), jnp.float32)],
        ),
        compiler_params=pltpu.CompilerParams(
            dimension_semantics=("parallel", "arbitrary"),
            vmem_limit_bytes=vmem_limit),
        cost_estimate=cost,
    )(proj, emb, lab2, lab_row)

    # ---- combine the per-core partials (tiny, O(B) plain-XLA epilogue) ----
    lse = lse_p[0]
    for i in range(1, P):
        lse = jnp.logaddexp(lse, lse_p[i])
    lab_logit = jnp.sum(lab_p, axis=0)
    sum_logit = jnp.sum(sum_p, axis=0)
    # targets = (1-eps)*onehot + eps/C  =>  CE = lse - (1-eps)*logit[label] - (eps/C)*sum(logits)
    # NOTE: some implementations distribute eps/(C-1) over non-target classes only.
    row_ce = lse - (1.0 - epsilon) * lab_logit - (epsilon / C) * sum_logit   # [2*B_pad, 1]
    row_valid = (jnp.arange(2 * B_pad) % B_pad < B)[:, None]
    inst = jnp.sum(jnp.where(row_valid, row_ce, 0.0)) / B                    # CE(vis) + CE(txt)
    glob = jnp.sum(glob_p)
    return inst, glob


def _reference(projection, vis, txt, labels, *, epsilon=0.0,
               scale_pos=10.0, scale_neg=40.0, alpha=0.6, beta=0.4):
    B = vis.shape[0]
    C = projection.shape[1]
    pn = projection / jnp.maximum(jnp.linalg.norm(projection, axis=0, keepdims=True), 1e-12)
    onehot = jax.nn.one_hot(labels, C)
    tgt = (1.0 - epsilon) * onehot + epsilon / C

    def ce(logits):
        logp = jax.nn.log_softmax(logits, axis=-1)
        return jnp.sum(-tgt * logp) / B

    inst = ce(vis @ pn) + ce(txt @ pn)

    vn = vis / jnp.maximum(jnp.linalg.norm(vis, axis=1, keepdims=True), 1e-12)
    tn = txt / jnp.maximum(jnp.linalg.norm(txt, axis=1, keepdims=True), 1e-12)
    sim = vn @ tn.T
    pos = (labels[:, None] == labels[None, :]).astype(jnp.float32)
    lp = jnp.log1p(jnp.exp(-scale_pos * (sim - alpha)))
    ln = jnp.log1p(jnp.exp(scale_neg * (sim - beta)))
    glob = (jnp.sum(pos * lp) + jnp.sum((1.0 - pos) * ln)) * 2.0 / B
    return inst, glob


if __name__ == "__main__":
    key = jax.random.PRNGKey(0)

    def make_inputs(k, B, D, C, n_ids):
        k_proj, k_vis, k_txt, k_lab = jax.random.split(k, 4)
        bound = float(np.sqrt(6.0 / (D + C)))         # xavier_uniform_ on a [D, C] tensor
        projection = jax.random.uniform(k_proj, (D, C), jnp.float32, -bound, bound)
        visual_embed = jax.random.normal(k_vis, (B, D), jnp.float32)
        textual_embed = jax.random.normal(k_txt, (B, D), jnp.float32)
        labels = jax.random.randint(k_lab, (B,), 0, n_ids, dtype=jnp.int32)
        return projection, visual_embed, textual_embed, labels

    def check(args, kwargs):
        inst, glob = embedding_loss(*args, **kwargs)
        jax.block_until_ready((inst, glob))
        ref_kwargs = {k: v for k, v in kwargs.items()
                      if k in ("epsilon", "scale_pos", "scale_neg", "alpha", "beta")}
        inst_ref, glob_ref = _reference(*args, **ref_kwargs)
        np.testing.assert_allclose(np.asarray(inst), np.asarray(inst_ref), rtol=1e-4, atol=1e-4)
        np.testing.assert_allclose(np.asarray(glob), np.asarray(glob_ref), rtol=1e-4, atol=1e-4)

    B, D = 8, 32
    k1, k2, k3, _ = jax.random.split(key, 4)

    # 1) small C (single 128-lane tile, single partial), default hyper-parameters
    args1 = make_inputs(k1, B, D, 16, 4)
    check(args1, {})

    # 2) label smoothing + alternative scales on the same inputs
    check(args1, dict(epsilon=0.1, scale_pos=5.0, scale_neg=20.0))

    # 3) two partials + ragged last tile: C=384 with 256-wide class tiles
    #    (second tile is a ragged read, masked in-kernel; no wrapper pad of C)
    args3 = make_inputs(k2, B, D, 384, 7)
    check(args3, dict(class_tile=256))

    # 4) odd tile count: C=640 with 128-wide class tiles -> 5 real tiles split 3/3,
    #    the last being a clamped, fully-masked duplicate; smoothing path on as well
    args4 = make_inputs(k3, B, D, 640, 9)
    check(args4, dict(class_tile=128, epsilon=0.05))

    # 5) bf16 operands (half the DMA bytes, bf16 MXU path) -- finiteness smoke check
    projection, visual_embed, textual_embed, labels = args1
    inst_bf, glob_bf = embedding_loss(projection.astype(jnp.bfloat16),
                                      visual_embed.astype(jnp.bfloat16),
                                      textual_embed.astype(jnp.bfloat16), labels)
    jax.block_until_ready((inst_bf, glob_bf))
    assert np.isfinite(float(inst_bf)) and np.isfinite(float(glob_bf))

    print("KERNEL_OK")
</pallas_src>

<mosaic_0001>
module attributes {stable_mosaic.version = 11 : i64} {
  func.func @_embedding_loss_kernel(%arg0: i32, %arg1: i32, %arg2: memref<32x128xf32, #tpu.memory_space<vmem>>, %arg3: memref<16x32xf32, #tpu.memory_space<vmem>>, %arg4: memref<16x1xi32, #tpu.memory_space<vmem>>, %arg5: memref<1x8xi32, #tpu.memory_space<vmem>>, %arg6: memref<1x16x1xf32, #tpu.memory_space<vmem>>, %arg7: memref<1x16x1xf32, #tpu.memory_space<vmem>>, %arg8: memref<1x16x1xf32, #tpu.memory_space<vmem>>, %arg9: memref<1x1x1xf32, #tpu.memory_space<vmem>>, %arg10: memref<16x1xf32, #tpu.memory_space<vmem>>) attributes {dimension_semantics = [#tpu.dimension_semantics<parallel>, #tpu.dimension_semantics<arbitrary>], iteration_bounds = array<i64: 1, 1>, scalar_prefetch = 0 : i64, scratch_operands = 1 : i64, tpu.core_type = #tpu.core_type<tc>, window_params = [{transform_indices = @transform_0, window_bounds = array<i64: 32, 128>}, {pipeline_mode = #tpu.pipeline_mode<synchronous>, transform_indices = @transform_1, window_bounds = array<i64: 16, 32>}, {pipeline_mode = #tpu.pipeline_mode<synchronous>, transform_indices = @transform_2, window_bounds = array<i64: 16, 1>}, {pipeline_mode = #tpu.pipeline_mode<synchronous>, transform_indices = @transform_3, window_bounds = array<i64: 1, 8>}, {transform_indices = @transform_4, window_bounds = array<i64: 1, 16, 1>}, {transform_indices = @transform_5, window_bounds = array<i64: 1, 16, 1>}, {transform_indices = @transform_6, window_bounds = array<i64: 1, 16, 1>}, {transform_indices = @transform_7, window_bounds = array<i64: 1, 1, 1>}]} {
    %c1_i32 = arith.constant 1 : i32
    %0 = arith.muli %arg0, %c1_i32 : i32
    %1 = arith.addi %0, %arg1 : i32
    %c128_i32 = arith.constant 128 : i32
    %2 = arith.muli %1, %c128_i32 : i32
    %c0_i32 = arith.constant 0 : i32
    %3 = arith.cmpi eq, %arg1, %c0_i32 : i32
    %4 = arith.extui %3 : i1 to i32
    %c0_i32_0 = arith.constant 0 : i32
    %5 = arith.cmpi ne, %4, %c0_i32_0 : i32
    scf.if %5 {
      %cst_34 = arith.constant -1.000000e+30 : f32
      %68 = vector.broadcast %cst_34 : f32 to vector<16x1xf32>
      %c0_35 = arith.constant 0 : index
      %c0_36 = arith.constant 0 : index
      %c0_37 = arith.constant 0 : index
      %69 = vector.load %arg6[%c0_35, %c0_36, %c0_37] : memref<1x16x1xf32, #tpu.memory_space<vmem>>, vector<1x16x1xf32>
      %70 = vector.shape_cast %69 : vector<1x16x1xf32> to vector<16x1xf32>
      %71 = vector.shape_cast %68 : vector<16x1xf32> to vector<1x16x1xf32>
      tpu.vector_store %arg6[%c0_35, %c0_36, %c0_37], %71 {strides = array<i32>} : memref<1x16x1xf32, #tpu.memory_space<vmem>>, vector<1x16x1xf32>,
      %cst_38 = arith.constant 0.000000e+00 : f32
      %72 = vector.broadcast %cst_38 : f32 to vector<16x1xf32>
      %c0_39 = arith.constant 0 : index
      %c0_40 = arith.constant 0 : index
      %73 = vector.load %arg10[%c0_39, %c0_40] : memref<16x1xf32, #tpu.memory_space<vmem>>, vector<16x1xf32>
      tpu.vector_store %arg10[%c0_39, %c0_40], %72 {strides = array<i32>} : memref<16x1xf32, #tpu.memory_space<vmem>>, vector<16x1xf32>,
      %cst_41 = arith.constant 0.000000e+00 : f32
      %74 = vector.broadcast %cst_41 : f32 to vector<16x1xf32>
      %c0_42 = arith.constant 0 : index
      %c0_43 = arith.constant 0 : index
      %c0_44 = arith.constant 0 : index
      %75 = vector.load %arg7[%c0_42, %c0_43, %c0_44] : memref<1x16x1xf32, #tpu.memory_space<vmem>>, vector<1x16x1xf32>
      %76 = vector.shape_cast %75 : vector<1x16x1xf32> to vector<16x1xf32>
      %77 = vector.shape_cast %74 : vector<16x1xf32> to vector<1x16x1xf32>
      tpu.vector_store %arg7[%c0_42, %c0_43, %c0_44], %77 {strides = array<i32>} : memref<1x16x1xf32, #tpu.memory_space<vmem>>, vector<1x16x1xf32>,
      %cst_45 = arith.constant 0.000000e+00 : f32
      %78 = vector.broadcast %cst_45 : f32 to vector<16x1xf32>
      %c0_46 = arith.constant 0 : index
      %c0_47 = arith.constant 0 : index
      %c0_48 = arith.constant 0 : index
      %79 = vector.load %arg8[%c0_46, %c0_47, %c0_48] : memref<1x16x1xf32, #tpu.memory_space<vmem>>, vector<1x16x1xf32>
      %80 = vector.shape_cast %79 : vector<1x16x1xf32> to vector<16x1xf32>
      %81 = vector.shape_cast %78 : vector<16x1xf32> to vector<1x16x1xf32>
      tpu.vector_store %arg8[%c0_46, %c0_47, %c0_48], %81 {strides = array<i32>} : memref<1x16x1xf32, #tpu.memory_space<vmem>>, vector<1x16x1xf32>,
      %cst_49 = arith.constant 0.000000e+00 : f32
      %82 = vector.broadcast %cst_49 : f32 to vector<1x1xf32>
      %c0_50 = arith.constant 0 : index
      %c0_51 = arith.constant 0 : index
      %c0_52 = arith.constant 0 : index
      %83 = vector.load %arg9[%c0_50, %c0_51, %c0_52] : memref<1x1x1xf32, #tpu.memory_space<vmem>>, vector<1x1x1xf32>
      %84 = vector.shape_cast %83 : vector<1x1x1xf32> to vector<1x1xf32>
      %85 = vector.shape_cast %82 : vector<1x1xf32> to vector<1x1x1xf32>
      tpu.vector_store %arg9[%c0_50, %c0_51, %c0_52], %85 {strides = array<i32>} : memref<1x1x1xf32, #tpu.memory_space<vmem>>, vector<1x1x1xf32>,
    } else {
    }
    %c0_i32_1 = arith.constant 0 : i32
    %6 = arith.cmpi eq, %arg0, %c0_i32_1 : i32
    %c0_i32_2 = arith.constant 0 : i32
    %7 = arith.cmpi eq, %arg1, %c0_i32_2 : i32
    %8 = arith.andi %6, %7 : i1
    %9 = arith.extui %8 : i1 to i32
    %c0_i32_3 = arith.constant 0 : i32
    %10 = arith.cmpi ne, %9, %c0_i32_3 : i32
    scf.if %10 {
      %c0_34 = arith.constant 0 : index
      %c0_35 = arith.constant 0 : index
      %68 = vector.load %arg3[%c0_34, %c0_35] : memref<16x32xf32, #tpu.memory_space<vmem>>, vector<16x32xf32>
      %69 = vector.extract_strided_slice %68 {offsets = [0, 0], sizes = [8, 32], strides = [1, 1]} : vector<16x32xf32> to vector<8x32xf32>
      %70 = vector.extract_strided_slice %68 {offsets = [8, 0], sizes = [8, 32], strides = [1, 1]} : vector<16x32xf32> to vector<8x32xf32>
      %71 = arith.mulf %69, %69 : vector<8x32xf32>
      %cst_36 = arith.constant dense<0.000000e+00> : vector<8xf32>
      %72 = vector.multi_reduction <add>, %71, %cst_36 [1] : vector<8x32xf32> to vector<8xf32>
      %73 = vector.shape_cast %72 : vector<8xf32> to vector<8x1xf32>
      %cst_37 = arith.constant 1.000000e-24 : f32
      %74 = vector.broadcast %cst_37 : f32 to vector<8x1xf32>
      %75 = arith.maximumf %73, %74 : vector<8x1xf32>
      %76 = math.rsqrt %75 : vector<8x1xf32>
      %77 = vector.broadcast %76 : vector<8x1xf32> to vector<8x32xf32>
      %78 = arith.mulf %69, %77 : vector<8x32xf32>
      %79 = arith.mulf %70, %70 : vector<8x32xf32>
      %cst_38 = arith.constant dense<0.000000e+00> : vector<8xf32>
      %80 = vector.multi_reduction <add>, %79, %cst_38 [1] : vector<8x32xf32> to vector<8xf32>
      %81 = vector.shape_cast %80 : vector<8xf32> to vector<8x1xf32>
      %cst_39 = arith.constant 1.000000e-24 : f32
      %82 = vector.broadcast %cst_39 : f32 to vector<8x1xf32>
      %83 = arith.maximumf %81, %82 : vector<8x1xf32>
      %84 = math.rsqrt %83 : vector<8x1xf32>
      %85 = vector.broadcast %84 : vector<8x1xf32> to vector<8x32xf32>
      %86 = arith.mulf %70, %85 : vector<8x32xf32>
      %cst_40 = arith.constant dense<0.000000e+00> : vector<8x8xf32>
      %87 = tpu.matmul %78, %86, %cst_40 {dimension_numbers = #tpu.dot_dimension_numbers<[1], [1], [0], [0], [0, 0, 1, 0], [], []>} : vector<8x32xf32>, vector<8x32xf32>, vector<8x8xf32> -> vector<8x8xf32>
      %c0_41 = arith.constant 0 : index
      %c0_42 = arith.constant 0 : index
      %88 = vector.load %arg4[%c0_41, %c0_42] : memref<16x1xi32, #tpu.memory_space<vmem>>, vector<16x1xi32>
      %89 = vector.extract_strided_slice %88 {offsets = [0, 0], sizes = [8, 1], strides = [1, 1]} : vector<16x1xi32> to vector<8x1xi32>
      %c0_43 = arith.constant 0 : index
      %c0_44 = arith.constant 0 : index
      %90 = vector.load %arg5[%c0_43, %c0_44] : memref<1x8xi32, #tpu.memory_space<vmem>>, vector<1x8xi32>
      %91 = tpu.iota {dimensions = array<i32: 0>} : vector<8x1xi32>
      %c8_i32 = arith.constant 8 : i32
      %92 = vector.broadcast %c8_i32 : i32 to vector<8x1xi32>
      %93 = arith.cmpi slt, %91, %92 : vector<8x1xi32>
      %94 = tpu.iota {dimensions = array<i32: 1>} : vector<1x8xi32>
      %c8_i32_45 = arith.constant 8 : i32
      %95 = vector.broadcast %c8_i32_45 : i32 to vector<1x8xi32>
      %96 = arith.cmpi slt, %94, %95 : vector<1x8xi32>
      %97 = vector.broadcast %93 : vector<8x1xi1> to vector<8x8xi1>
      %98 = vector.broadcast %96 : vector<1x8xi1> to vector<8x8xi1>
      %99 = arith.andi %97, %98 : vector<8x8xi1>
      %100 = vector.broadcast %89 : vector<8x1xi32> to vector<8x8xi32>
      %101 = vector.broadcast %90 : vector<1x8xi32> to vector<8x8xi32>
      %102 = arith.cmpi eq, %100, %101 : vector<8x8xi32>
      %103 = arith.andi %102, %99 : vector<8x8xi1>
      %cst_46 = arith.constant 6.000000e-01 : f32
      %104 = vector.broadcast %cst_46 : f32 to vector<8x8xf32>
      %105 = arith.subf %87, %104 : vector<8x8xf32>
      %cst_47 = arith.constant -1.000000e+01 : f32
      %106 = vector.broadcast %cst_47 : f32 to vector<8x8xf32>
      %107 = arith.mulf %106, %105 : vector<8x8xf32>
      %cst_48 = arith.constant 4.000000e-01 : f32
      %108 = vector.broadcast %cst_48 : f32 to vector<8x8xf32>
      %109 = arith.subf %87, %108 : vector<8x8xf32>
      %cst_49 = arith.constant 4.000000e+01 : f32
      %110 = vector.broadcast %cst_49 : f32 to vector<8x8xf32>
      %111 = arith.mulf %110, %109 : vector<8x8xf32>
      %112 = arith.select %103, %107, %111 : vector<8x8xi1>, vector<8x8xf32>
      %cst_50 = arith.constant 0.000000e+00 : f32
      %113 = vector.broadcast %cst_50 : f32 to vector<8x8xf32>
      %114 = arith.maximumf %112, %113 : vector<8x8xf32>
      %115 = math.absf %112 : vector<8x8xf32>
      %cst_51 = arith.constant 0.000000e+00 : f32
      %116 = vector.broadcast %cst_51 : f32 to vector<8x8xf32>
      %117 = arith.subf %116, %115 : vector<8x8xf32>
      %118 = math.exp %117 : vector<8x8xf32>
      %119 = math.log1p %118 : vector<8x8xf32>
      %120 = arith.addf %114, %119 : vector<8x8xf32>
      %cst_52 = arith.constant 0.000000e+00 : f32
      %121 = vector.broadcast %cst_52 : f32 to vector<8x8xf32>
      %122 = arith.select %99, %120, %121 : vector<8x8xi1>, vector<8x8xf32>
      %123 = vector.shape_cast %122 : vector<8x8xf32> to vector<1x8x8xf32>
      %cst_53 = arith.constant dense<0.000000e+00> : vector<1xf32>
      %124 = vector.multi_reduction <add>, %123, %cst_53 [1, 2] : vector<1x8x8xf32> to vector<1xf32>
      %125 = vector.shape_cast %124 : vector<1xf32> to vector<1x1x1xf32>
      %126 = vector.extract %125[0, 0, 0] : f32 from vector<1x1x1xf32>
      %127 = vector.broadcast %126 : f32 to vector<1x1xf32>
      %cst_54 = arith.constant 2.500000e-01 : f32
      %128 = vector.broadcast %cst_54 : f32 to vector<1x1xf32>
      %129 = arith.mulf %127, %128 : vector<1x1xf32>
      %c0_55 = arith.constant 0 : index
      %c0_56 = arith.constant 0 : index
      %c0_57 = arith.constant 0 : index
      %130 = vector.load %arg9[%c0_55, %c0_56, %c0_57] : memref<1x1x1xf32, #tpu.memory_space<vmem>>, vector<1x1x1xf32>
      %131 = vector.shape_cast %130 : vector<1x1x1xf32> to vector<1x1xf32>
      %132 = vector.shape_cast %129 : vector<1x1xf32> to vector<1x1x1xf32>
      tpu.vector_store %arg9[%c0_55, %c0_56, %c0_57], %132 {strides = array<i32>} : memref<1x1x1xf32, #tpu.memory_space<vmem>>, vector<1x1x1xf32>,
    } else {
    }
    %c0 = arith.constant 0 : index
    %c0_4 = arith.constant 0 : index
    %11 = vector.load %arg2[%c0, %c0_4] : memref<32x128xf32, #tpu.memory_space<vmem>>, vector<32x128xf32>
    %12 = arith.mulf %11, %11 : vector<32x128xf32>
    %cst = arith.constant dense<0.000000e+00> : vector<128xf32>
    %13 = vector.multi_reduction <add>, %12, %cst [0] : vector<32x128xf32> to vector<128xf32>
    %14 = vector.shape_cast %13 : vector<128xf32> to vector<1x128xf32>
    %cst_5 = arith.constant 1.000000e-24 : f32
    %15 = vector.broadcast %cst_5 : f32 to vector<1x128xf32>
    %16 = arith.maximumf %14, %15 : vector<1x128xf32>
    %17 = math.rsqrt %16 : vector<1x128xf32>
    %c0_6 = arith.constant 0 : index
    %c0_7 = arith.constant 0 : index
    %18 = vector.load %arg3[%c0_6, %c0_7] : memref<16x32xf32, #tpu.memory_space<vmem>>, vector<16x32xf32>
    %cst_8 = arith.constant dense<0.000000e+00> : vector<16x128xf32>
    %19 = tpu.matmul %18, %11, %cst_8 {dimension_numbers = #tpu.dot_dimension_numbers<[1], [0], [0], [1], [0, 0, 1, 1], [], []>} : vector<16x32xf32>, vector<32x128xf32>, vector<16x128xf32> -> vector<16x128xf32>
    %20 = vector.broadcast %17 : vector<1x128xf32> to vector<16x128xf32>
    %21 = arith.mulf %19, %20 : vector<16x128xf32>
    %c0_9 = arith.constant 0 : index
    %c0_10 = arith.constant 0 : index
    %22 = vector.load %arg4[%c0_9, %c0_10] : memref<16x1xi32, #tpu.memory_space<vmem>>, vector<16x1xi32>
    %23 = tpu.iota {dimensions = array<i32: 1>} : vector<1x128xi32>
    %c16_i32 = arith.constant 16 : i32
    %24 = arith.subi %c16_i32, %2 : i32
    %25 = vector.broadcast %24 : i32 to vector<1x128xi32>
    %26 = arith.cmpi slt, %23, %25 : vector<1x128xi32>
    %cst_11 = arith.constant -1.000000e+30 : f32
    %27 = vector.shape_cast %26 : vector<1x128xi1> to vector<1x128xi1>
    %28 = vector.broadcast %27 : vector<1x128xi1> to vector<16x128xi1>
    %29 = vector.broadcast %cst_11 : f32 to vector<16x128xf32>
    %30 = arith.select %28, %21, %29 : vector<16x128xi1>, vector<16x128xf32>
    %c0_12 = arith.constant 0 : index
    %c0_13 = arith.constant 0 : index
    %c0_14 = arith.constant 0 : index
    %31 = vector.load %arg6[%c0_12, %c0_13, %c0_14] : memref<1x16x1xf32, #tpu.memory_space<vmem>>, vector<1x16x1xf32>
    %32 = vector.shape_cast %31 : vector<1x16x1xf32> to vector<16x1xf32>
    %cst_15 = arith.constant dense<0xFF800000> : vector<16xf32>
    %33 = vector.multi_reduction <maximumf>, %30, %cst_15 [1] : vector<16x128xf32> to vector<16xf32>
    %34 = vector.shape_cast %33 : vector<16xf32> to vector<16x1xf32>
    %35 = arith.maximumf %32, %34 : vector<16x1xf32>
    %c0_16 = arith.constant 0 : index
    %c0_17 = arith.constant 0 : index
    %36 = vector.load %arg10[%c0_16, %c0_17] : memref<16x1xf32, #tpu.memory_space<vmem>>, vector<16x1xf32>
    %37 = arith.subf %32, %35 : vector<16x1xf32>
    %38 = math.exp %37 : vector<16x1xf32>
    %39 = arith.mulf %36, %38 : vector<16x1xf32>
    %40 = vector.broadcast %35 : vector<16x1xf32> to vector<16x128xf32>
    %41 = arith.subf %30, %40 : vector<16x128xf32>
    %42 = math.exp %41 : vector<16x128xf32>
    %cst_18 = arith.constant dense<0.000000e+00> : vector<16xf32>
    %43 = vector.multi_reduction <add>, %42, %cst_18 [1] : vector<16x128xf32> to vector<16xf32>
    %44 = vector.shape_cast %43 : vector<16xf32> to vector<16x1xf32>
    %45 = arith.addf %39, %44 : vector<16x1xf32>
    %c0_19 = arith.constant 0 : index
    %c0_20 = arith.constant 0 : index
    %46 = vector.load %arg10[%c0_19, %c0_20] : memref<16x1xf32, #tpu.memory_space<vmem>>, vector<16x1xf32>
    tpu.vector_store %arg10[%c0_19, %c0_20], %45 {strides = array<i32>} : memref<16x1xf32, #tpu.memory_space<vmem>>, vector<16x1xf32>,
    %c0_21 = arith.constant 0 : index
    %c0_22 = arith.constant 0 : index
    %c0_23 = arith.constant 0 : index
    %47 = vector.load %arg6[%c0_21, %c0_22, %c0_23] : memref<1x16x1xf32, #tpu.memory_space<vmem>>, vector<1x16x1xf32>
    %48 = vector.shape_cast %47 : vector<1x16x1xf32> to vector<16x1xf32>
    %49 = vector.shape_cast %35 : vector<16x1xf32> to vector<1x16x1xf32>
    tpu.vector_store %arg6[%c0_21, %c0_22, %c0_23], %49 {strides = array<i32>} : memref<1x16x1xf32, #tpu.memory_space<vmem>>, vector<1x16x1xf32>,
    %c0_24 = arith.constant 0 : index
    %c0_25 = arith.constant 0 : index
    %c0_26 = arith.constant 0 : index
    %50 = vector.load %arg7[%c0_24, %c0_25, %c0_26] : memref<1x16x1xf32, #tpu.memory_space<vmem>>, vector<1x16x1xf32>
    %51 = vector.shape_cast %50 : vector<1x16x1xf32> to vector<16x1xf32>
    %52 = vector.broadcast %2 : i32 to vector<16x1xi32>
    %53 = arith.subi %22, %52 : vector<16x1xi32>
    %54 = vector.broadcast %23 : vector<1x128xi32> to vector<16x128xi32>
    %55 = vector.broadcast %53 : vector<16x1xi32> to vector<16x128xi32>
    %56 = arith.cmpi eq, %54, %55 : vector<16x128xi32>
    %cst_27 = arith.constant 0.000000e+00 : f32
    %57 = vector.broadcast %cst_27 : f32 to vector<16x128xf32>
    %58 = arith.select %56, %21, %57 : vector<16x128xi1>, vector<16x128xf32>
    %cst_28 = arith.constant dense<0.000000e+00> : vector<16xf32>
    %59 = vector.multi_reduction <add>, %58, %cst_28 [1] : vector<16x128xf32> to vector<16xf32>
    %60 = vector.shape_cast %59 : vector<16xf32> to vector<16x1xf32>
    %61 = arith.addf %51, %60 : vector<16x1xf32>
    %c0_29 = arith.constant 0 : index
    %c0_30 = arith.constant 0 : index
    %c0_31 = arith.constant 0 : index
    %62 = vector.load %arg7[%c0_29, %c0_30, %c0_31] : memref<1x16x1xf32, #tpu.memory_space<vmem>>, vector<1x16x1xf32>
    %63 = vector.shape_cast %62 : vector<1x16x1xf32> to vector<16x1xf32>
    %64 = vector.shape_cast %61 : vector<16x1xf32> to vector<1x16x1xf32>
    tpu.vector_store %arg7[%c0_29, %c0_30, %c0_31], %64 {strides = array<i32>} : memref<1x16x1xf32, #tpu.memory_space<vmem>>, vector<1x16x1xf32>,
    %c0_i32_32 = arith.constant 0 : i32
    %65 = arith.cmpi eq, %arg1, %c0_i32_32 : i32
    %66 = arith.extui %65 : i1 to i32
    %c0_i32_33 = arith.constant 0 : i32
    %67 = arith.cmpi ne, %66, %c0_i32_33 : i32
    scf.if %67 {
      %c0_34 = arith.constant 0 : index
      %c0_35 = arith.constant 0 : index
      %c0_36 = arith.constant 0 : index
      %68 = vector.load %arg6[%c0_34, %c0_35, %c0_36] : memref<1x16x1xf32, #tpu.memory_space<vmem>>, vector<1x16x1xf32>
      %69 = vector.shape_cast %68 : vector<1x16x1xf32> to vector<16x1xf32>
      %c0_37 = arith.constant 0 : index
      %c0_38 = arith.constant 0 : index
      %70 = vector.load %arg10[%c0_37, %c0_38] : memref<16x1xf32, #tpu.memory_space<vmem>>, vector<16x1xf32>
      %71 = math.log %70 : vector<16x1xf32>
      %72 = arith.addf %69, %71 : vector<16x1xf32>
      %c0_39 = arith.constant 0 : index
      %c0_40 = arith.constant 0 : index
      %c0_41 = arith.constant 0 : index
      %73 = vector.load %arg6[%c0_39, %c0_40, %c0_41] : memref<1x16x1xf32, #tpu.memory_space<vmem>>, vector<1x16x1xf32>
      %74 = vector.shape_cast %73 : vector<1x16x1xf32> to vector<16x1xf32>
      %75 = vector.shape_cast %72 : vector<16x1xf32> to vector<1x16x1xf32>
      tpu.vector_store %arg6[%c0_39, %c0_40, %c0_41], %75 {strides = array<i32>} : memref<1x16x1xf32, #tpu.memory_space<vmem>>, vector<1x16x1xf32>,
    } else {
    }
    return
  }
  func.func @transform_0(%arg0: i32, %arg1: i32) -> (i32, i32) {
    %c1_i32 = arith.constant 1 : i32
    %0 = arith.muli %arg0, %c1_i32 : i32
    %1 = arith.addi %0, %arg1 : i32
    %c0_i32 = arith.constant 0 : i32
    %c0_i32_0 = arith.constant 0 : i32
    return %c0_i32, %1 : i32, i32
  }
  func.func @transform_1(%arg0: i32, %arg1: i32) -> (i32, i32) {
    %c0_i32 = arith.constant 0 : i32
    %c0_i32_0 = arith.constant 0 : i32
    %c0_i32_1 = arith.constant 0 : i32
    return %c0_i32, %c0_i32_0 : i32, i32
  }
  func.func @transform_2(%arg0: i32, %arg1: i32) -> (i32, i32) {
    %c0_i32 = arith.constant 0 : i32
    %c0_i32_0 = arith.constant 0 : i32
    %c0_i32_1 = arith.constant 0 : i32
    return %c0_i32, %c0_i32_0 : i32, i32
  }
  func.func @transform_3(%arg0: i32, %arg1: i32) -> (i32, i32) {
    %c0_i32 = arith.constant 0 : i32
    %c0_i32_0 = arith.constant 0 : i32
    %c0_i32_1 = arith.constant 0 : i32
    return %c0_i32, %c0_i32_0 : i32, i32
  }
  func.func @transform_4(%arg0: i32, %arg1: i32) -> (i32, i32, i32) {
    %c0_i32 = arith.constant 0 : i32
    %c0_i32_0 = arith.constant 0 : i32
    %c0_i32_1 = arith.constant 0 : i32
    return %arg0, %c0_i32, %c0_i32_0 : i32, i32, i32
  }
  func.func @transform_5(%arg0: i32, %arg1: i32) -> (i32, i32, i32) {
    %c0_i32 = arith.constant 0 : i32
    %c0_i32_0 = arith.constant 0 : i32
    %c0_i32_1 = arith.constant 0 : i32
    return %arg0, %c0_i32, %c0_i32_0 : i32, i32, i32
  }
  func.func @transform_6(%arg0: i32, %arg1: i32) -> (i32, i32, i32) {
    %c0_i32 = arith.constant 0 : i32
    %c0_i32_0 = arith.constant 0 : i32
    %c0_i32_1 = arith.constant 0 : i32
    return %arg0, %c0_i32, %c0_i32_0 : i32, i32, i32
  }
  func.func @transform_7(%arg0: i32, %arg1: i32) -> (i32, i32, i32) {
    %c0_i32 = arith.constant 0 : i32
    %c0_i32_0 = arith.constant 0 : i32
    %c0_i32_1 = arith.constant 0 : i32
    return %arg0, %c0_i32, %c0_i32_0 : i32, i32, i32
  }
}

</mosaic_0001>

<bundles_post_ra>
// kernel: tpu_custom_call.1
= control target key start
LH: loop header
LB: loop body
LE: loop exit
PB: predicated region body
PF: predicated region fallthrough
CT: control target
= control target key end

     0   :  { %13 = vsyncpa [#allocation4], 0  ;;  %s746_s0 = inlined_call_operand.hbm [shape: f32[32,128], index: 0, kind: input, shape index: {}]   ;;  %s747_s1 = inlined_call_operand.vmem [shape: f32[16,32], index: 1, kind: input, shape index: {}]   ;;  %s748_s2 = inlined_call_operand.vmem [shape: s32[16,1], index: 2, kind: input, shape index: {}]   ;;  %s749_s3 = inlined_call_operand.vmem [shape: s32[1,8], index: 3, kind: input, shape index: {}]   ;;  %s750_s4 = inlined_call_operand.vmem [shape: f32[1,16,1], index: 4, kind: output, shape index: {0}]   ;;  %s751_s5 = inlined_call_operand.vmem [shape: f32[1,16,1], index: 5, kind: output, shape index: {1}]   ;;  %s752_s6 = inlined_call_operand.vmem [shape: f32[1,16,1], index: 6, kind: output, shape index: {2}]   ;;  %s753_s7 = inlined_call_operand.hbm [shape: f32[1,1,1], index: 7, kind: output, shape index: {3}]  }
   0x1   :  { %14 = vsyncpa [#allocation5], 0  ;;  %s548_s24 = smov [#allocation3]  }
   0x2   :  { %s23_s25 = sshll.u32 %s548_s24, 4  ;;  %s24_s25 = int_to_ptr.vmem [resolvable:$true] %s23_s25 }
   0x3   :  { %s512_s26 = scalar_lea.vmem %s24_s25, 512  ;;  %p517_p1 = scmp.lt.s32.totalorder %s24_s25, %s24_s25 }
   0x4   :  { %p513_p0 = scmp.ne.s32.totalorder %s24_s25, %s512_s26  ;;  %p518_p2 = scmp.lt.s32.totalorder %s512_s26, %s512_s26 }
   0x6   :  { %p519_p3 = por %p518_p2, %p517_p1 }
   0x8   :  { %p520_p4 = pnand %p519_p3, %p513_p0 }
   0xa   :  { %523 = shalt.err (!%p520_p4)
}
   0xb   :  { %s549_s27 = smov 128   ;;  %s550_s28 = smov 8  }
   0xc   :  { %29 = dma.hbm_to_vmem [thread:$0]  %s746_s0, 512, %s24_s25, [#allocation4], %s549_s27, %s549_s27, %s550_s28  }
   0xd   :  { %544 = dma.done.wait [#allocation4], 512  }
   0xe   :  { %545 = vsyncadd [#allocation4], 4294966784  ;;  %vm65_vm0 = vcmask 261120   ;;  %v216_v0 = vld [vmem:[#allocation3 + $0x18] sm:$0xff]  ;;  %v215_v1 = vld [vmem:[#allocation3 + $0x10] sm:$0xff]  ;;  %vm46_vm1 = vcmask 7168   ;;  %v160_v36 = vlaneseq }
   0xf   :  { %v214_v2 = vld [vmem:[#allocation3 + $0x8] sm:$0xff]  ;;  %459 = vmatprep.subr.mxu1 %v216_v0  ;;  %v219_v3 = vmul.f32 %v215_v1, %v215_v1  ;;  %v213_v5 = vld [vmem:[#allocation3] sm:$0xff]  ;;  %v232_v6 = vld [vmem:[%s747_s1] sm:$0xff]  ;;  %v220_v11 = vmul.f32 %v216_v0, %v216_v0  ;;  %v551_v17 = vmov 0.0   ;;  %vm552_vm2 = vmmov 0  }
  0x10   :  { %v218_v4 = vmul.f32 %v214_v2, %v214_v2  ;;  %v233_v7 = vld [vmem:[%s747_s1 + $0x8] sm:$0xff]  ;;  %460 = vmatpush3.msra.mxu1 %v216_v0  ;;  %v217_v8 = vmul.f32 %v213_v5, %v213_v5  ;;  %467 = vmatprep.mubr.msk.f32.mxu1 %vm65_vm0, %v232_v6  ;;  %v64_v10 = vmul.f32 %v232_v6, %v232_v6  ;;  %v155_v18 = vld [vmem:[%s748_s2] sm:$0xff]  ;;  %v553_v19 = vmov 0  }
  0x11   :  { %v72_v9 = vmul.f32 %v233_v7, %v233_v7  ;;  %461 = vmatprep.subr.mxu1 %v215_v1  ;;  %53 = vst.msk [vmem:[%s752_s6] sm:$0xff] %vm46_vm1, %v551_v17  ;;  %54 = vst.msk [vmem:[%s752_s6 + $0x8] sm:$0xff] %vm46_vm1, %v551_v17  ;;  %454 = vmatprep.subr.mxu0 %v551_v17  ;;  %v554_v20 = vmov -1e+30   ;;  %v648_v38 = vand.u32 127, %v160_v36  ;;  %v319_v55 = vld [vmem:[%s748_s2 + $0x8] sm:$0xff] }
  0x12   :  { %462 = vmatpush3.msra.mxu1 %v215_v1  ;;  %v221_v12 = vadd.f32 %v218_v4, %v217_v8  ;;  %v66_v15 = vsel %vm65_vm0, %v64_v10, 0.0  ;;  %49 = vst.msk [vmem:[#allocation2] sm:$0xff] %vm46_vm1, %v551_v17  ;;  %50 = vst.msk [vmem:[#allocation2 + $0x8] sm:$0xff] %vm46_vm1, %v551_v17  ;;  %456 = vmatprep.mubr.msk.f32.mxu0 %vm552_vm2, %v551_v17  ;;  %v441_v53 = vld [vmem:[%s749_s3] ss:$0 sm:$0xff]  ;;  %vm198_vm8 = vcmask 64512  }
  0x13   :  { %v73_v13 = vsel %vm65_vm0, %v72_v9, 0.0  ;;  %463 = vmatprep.subr.mxu1 %v214_v2  ;;  %51 = vst.msk [vmem:[%s751_s5] sm:$0xff] %vm46_vm1, %v551_v17  ;;  %52 = vst.msk [vmem:[%s751_s5 + $0x8] sm:$0xff] %vm46_vm1, %v551_v17  ;;  %480 = vset.pattern.permute.xlu0 %v553_v19  ;;  %vm324_vm3 = vcmp.lt.s32.totalorder %v648_v38, 16  ;;  %vm162_vm4 = vcmp.lt.s32.totalorder %v648_v38, 8  ;;  %vm55_vm9 = vcmask 0  }
  0x14   :  { %74 = vadd.xlane.f32.xlu0 %v73_v13  ;;  %464 = vmatpush3.msra.mxu1 %v214_v2  ;;  %v222_v14 = vadd.f32 %v221_v12, %v219_v3  ;;  %47 = vst.msk [vmem:[%s750_s4] sm:$0xff] %vm46_vm1, %v554_v20  ;;  %48 = vst.msk [vmem:[%s750_s4 + $0x8] sm:$0xff] %vm46_vm1, %v554_v20  ;;  %s555_s2 = smov [#allocation6]  }
  0x15   :  { %465 = vmatprep.subr.mxu1 %v213_v5  ;;  %481 = vset.pattern.permute.xlu1 %v553_v19  ;;  %56 = vst.msk [vmem:[#allocation6] sm:$0x1] %vm55_vm9, %v551_v17  ;;  %s424_s3 = sshll.u32 %s555_s2, 4  ;;  %s425_s3 = int_to_ptr.vmem [resolvable:$true] %s424_s3 }
  0x16   :  { %v223_v16 = vadd.f32 %v222_v14, %v220_v11  ;;  %466 = vmatpush3.msra.mxu1 %v213_v5  ;;  %s524_s1 = scalar_lea.vmem %s425_s3, 16  ;;  %s528_s12 = scalar_lea.vmem %s425_s3, 32 }
  0x17   :  { %468 = vmatmul.mubr.msk.f32.vlgmr.msra.gmra.mxu1 %vm65_vm0, %v233_v7  ;;  %p525_p5 = scmp.ne.s32.totalorder %s425_s3, %s524_s1  ;;  %p529_p6 = scmp.lt.s32.totalorder %s425_s3, %s425_s3 }
  0x18   :  { %67 = vadd.xlane.f32.xlu0 %v66_v15  ;;  %v224_v28 = vrot.slane %v223_v16, 4  ;;  %p530_p7 = scmp.lt.s32.totalorder %s528_s12, %s524_s1 }
  0x1a   :  { %v225_v30 = vadd.f32 %v224_v28, %v223_v16  ;;  %p531_p8 = por %p530_p7, %p529_p6 }
  0x1b   :  { %v660_v45 = vld [vmem:[%s750_s4] sm:$0xff]  ;;  %v668_v48 = vld [vmem:[%s750_s4 + $0x8] sm:$0xff] }
  0x1c   :  { %v226_v31 = vrot.slane %v225_v30, 2  ;;  %p532_p9 = pnand %p531_p8, %p525_p5 }
  0x1e   :  { %v227_v32 = vadd.f32 %v226_v31, %v225_v30 }
  0x20   :  { %v228_v33 = vrot.slane %v227_v32, 1 }
  0x22   :  { %v229_v34 = vadd.f32 %v228_v33, %v227_v32 }
  0x24   :  { %v230_v35 = vmax.f32 %v229_v34, 1e-24 }
  0x2e   :  { %169 = vperm.xlu0 %480, %v155_v18  }
  0x9d   :  { %v75_v21 = vpop.xlane.xlu0 %74 }
  0x9e   :  { %v76_v22 = vmax.f32 %v75_v21, 1e-24 }
  0xa0   :  { %482 = vrsqrt.f32 %v76_v22 }
  0xa1   :  { %v68_v23 = vpop.xlane.xlu0 %67 }
  0xa2   :  { %v69_v24 = vmax.f32 %v68_v23, 1e-24 }
  0xa4   :  { %484 = vrsqrt.f32 %v69_v24 }
  0xa5   :  { %486 = vrsqrt.f32 %v230_v35 }
  0xa9   :  { %v170_v54 = vpop.permute.xlu0 %169 }
  0xaa   :  { %vm175_vm5 = vcmp.eq.s32.totalorder %v170_v54, %v441_v53 }
  0xab   :  { %vm176_vm6 = vmand %vm175_vm5, %vm162_vm4 }
  0xad   :  { %v483_v25 = vpop.eup %482 }
  0xae   :  { %v78_v26 = vmul.f32 %v483_v25, %v233_v7 }
  0xb0   :  { %455 = vmatpush3.xpose.msk.msra.mxu0 %vm65_vm0, %v78_v26 }
  0xb1   :  { %v485_v27 = vpop.eup %484 }
  0xb2   :  { %v71_v29 = vmul.f32 %v485_v27, %v232_v6  ;;  %v487_v39 = vpop.eup %486 }
  0xb4   :  { %457 = vmatmul.mubr.msk.f32.vlgmr.msra.gmra.mxu0 %vm65_vm0, %v71_v29 }
  0xd7   :  { %v469_v37 = vpop.f32.mrf.mxu1 }
  0xd8   :  { %v653_v42 = vmul.f32 %v487_v39, %v469_v37 }
  0xd9   :  { %v307_v40 = vpop.f32.mrf.mxu1 }
  0xda   :  { %v650_v41 = vmul.f32 %v487_v39, %v307_v40  ;;  %v328_v44 = vsel %vm324_vm3, %v653_v42, -1e+30 }
  0xdc   :  { %v327_v43 = vsel %vm324_vm3, %v650_v41, -1e+30 }
  0xdd   :  { %331 = vmax.xlane.f32.xlu1 %v327_v43 }
  0xe1   :  { %333 = vmax.xlane.f32.xlu1 %v328_v44 }
 0x166   :  { %v332_v46 = vpop.xlane.xlu1 %331 }
 0x167   :  { %v663_v47 = vmax.f32 %v660_v45, %v332_v46 }
 0x169   :  { %v339_v49 = vsub.f32 %v660_v45, %v663_v47  ;;  %372 = vst.msk [vmem:[%s750_s4] sm:$0xff] %vm46_vm1, %v663_v47  ;;  %349 = vperm.xlu1 %481, %v663_v47  }
 0x16a   :  { %v334_v50 = vpop.xlane.xlu1 %333 }
 0x16b   :  { %v679_v51 = vmax.f32 %v668_v48, %v334_v50  ;;  %v341_v34 = vmul.f32 1.442695, %v339_v49 }
 0x16d   :  { %v340_v52 = vsub.f32 %v668_v48, %v679_v51  ;;  %373 = vst.msk [vmem:[%s750_s4 + $0x8] sm:$0xff] %vm46_vm1, %v679_v51  ;;  %354 = vperm.xlu1 %481, %v679_v51  }
 0x16f   :  { %v343_v37 = vmul.f32 1.442695, %v340_v52 }
 0x171   :  { %380 = vperm.xlu1 %481, %v155_v18  }
 0x174   :  { %v151_v56 = vpop.f32.mrf.mxu0 }
 0x175   :  { %v442_v57 = vadd.f32 -0.6, %v151_v56  ;;  %v443_v58 = vadd.f32 -0.4, %v151_v56  ;;  %383 = vperm.xlu1 %481, %v319_v55  }
 0x176   :  { %v458_v59 = vpop.f32.mrf.mxu0 }
 0x177   :  { %v178_v60 = vmul.f32 -10.0, %v442_v57  ;;  %v180_v61 = vmul.f32 40.0, %v443_v58 }
 0x179   :  { %v181_v62 = vsel %vm176_vm6, %v178_v60, %v180_v61 }
 0x17a   :  { %v183_v63 = vand.u32 2147483647, %v181_v62  ;;  %v182_v9 = vmax.f32 %v181_v62, 0.0 }
 0x17c   :  { %v184_v0 = vsub.f32 0.0, %v183_v63 }
 0x17e   :  { %v185_v1 = vmul.f32 1.442695, %v184_v0 }
 0x180   :  { %488 = vpow2.f32 %v185_v1 }
 0x18d   :  { %v489_v2 = vpop.eup %488 }
 0x18e   :  { %v187_v3 = vadd.f32 1.0, %v489_v2  ;;  %v190_v4 = vmul.f32 -0.5, %v489_v2  ;;  %v193_v6 = vand.u32 2147483647, %v489_v2 }
 0x190   :  { %490 = vlog2.f32 %v187_v3  ;;  %v191_v5 = vadd.f32 1.0, %v190_v4  ;;  %vm194_vm7 = vcmp.lt.f32.partialorder %v193_v6, 0.0004427343 }
 0x192   :  { %v192_v7 = vmul.f32 %v489_v2, %v191_v5 }
 0x19d   :  { %v491_v8 = vpop.eup %490 }
 0x19e   :  { %v189_v10 = vmul.f32 0.6931472, %v491_v8 }
 0x1a0   :  { %v195_v11 = vsel %vm194_vm7, %v192_v7, %v189_v10 }
 0x1a1   :  { %v196_v12 = vadd.f32 %v195_v11, %v182_v9 }
 0x1a3   :  { %v197_v13 = vsel %vm162_vm4, %v196_v12, 0.0 }
 0x1a4   :  { %v199_v14 = vsel %vm198_vm8, %v197_v13, 0.0 }
 0x1a5   :  { %200 = vadd.xlane.f32.xlu1 %v199_v14 }
 0x1e4   :  { %v350_v15 = vpop.permute.xlu1 %349 }
 0x1e5   :  { %v357_v16 = vsub.f32 %v327_v43, %v350_v15 }
 0x1e7   :  { %v359_v18 = vmul.f32 1.442695, %v357_v16 }
 0x1e8   :  { %v355_v19 = vpop.permute.xlu1 %354 }
 0x1e9   :  { %492 = vpow2.f32 %v359_v18  ;;  %v358_v20 = vsub.f32 %v328_v44, %v355_v19 }
 0x1eb   :  { %v361_v21 = vmul.f32 1.442695, %v358_v20 }
 0x1ec   :  { %v381_v23 = vpop.permute.xlu1 %380 }
 0x1ed   :  { %494 = vpow2.f32 %v361_v21  ;;  %vm385_vm10 = vcmp.eq.s32.totalorder %v648_v38, %v381_v23 }
 0x1ee   :  { %v387_v26 = vsel %vm385_vm10, %v650_v41, 0.0  ;;  %496 = vpow2.f32 %v341_v34 }
 0x1f0   :  { %v384_v25 = vpop.permute.xlu1 %383 }
 0x1f1   :  { %vm386_vm11 = vcmp.eq.s32.totalorder %v648_v38, %v384_v25 }
 0x1f2   :  { %v388_v27 = vsel %vm386_vm11, %v653_v42, 0.0 }
 0x1f6   :  { %v493_v22 = vpop.eup %492 }
 0x1f7   :  { %363 = vadd.xlane.f32.xlu0 %v493_v22 }
 0x1fa   :  { %v495_v24 = vpop.eup %494 }
 0x1fb   :  { %365 = vadd.xlane.f32.xlu1 %v495_v24 }
 0x1ff   :  { %389 = vadd.xlane.f32.xlu1 %v387_v26 }
 0x203   :  { %391 = vadd.xlane.f32.xlu1 %v388_v27 }
 0x22e   :  { %v201_v28 = vpop.xlane.xlu1 %200 }
 0x22f   :  { %v202_v29 = vrot.slane %v201_v28, 4 }
 0x231   :  { %v203_v30 = vadd.f32 %v202_v29, %v201_v28 }
 0x233   :  { %v204_v17 = vrot.slane %v203_v30, 2 }
 0x235   :  { %v205_v31 = vadd.f32 %v204_v17, %v203_v30 }
 0x237   :  { %v206_v32 = vrot.slane %v205_v31, 1 }
 0x239   :  { %v207_v33 = vadd.f32 %v206_v32, %v205_v31 }
 0x23b   :  { %470 = vpush %v207_v33 }
 0x26c   :  { %s471_s0 = spop %470 }
 0x26d   :  { %v209_v35 = vstv %s471_s0 }
 0x26e   :  { %v210_v36 = vmul.f32 0.25, %v209_v35 }
 0x270   :  { %212 = vst.msk [vmem:[#allocation6] sm:$0x1] %vm55_vm9, %v210_v36 }
 0x271   :  { %535 = shalt.err (!%p532_p9)
}
 0x272   :  { %427 = dma.vmem_to_hbm [thread:$0]  %s425_s3, 16, %s753_s7, [#allocation5]   ;;  %498 = vpow2.f32 %v343_v37  ;;  %v497_v38 = vpop.eup %496  ;;  %v337_v39 = vld [vmem:[#allocation2] sm:$0xff]  ;;  %v338_v43 = vld [vmem:[#allocation2 + $0x8] sm:$0xff] }
 0x273   :  { %v345_v40 = vmul.f32 %v497_v38, %v337_v39  ;;  %v374_v48 = vld [vmem:[%s751_s5] sm:$0xff]  ;;  %v375_v52 = vld [vmem:[%s751_s5 + $0x8] sm:$0xff] }
 0x274   :  { %v400_v58 = vld [vmem:[%s750_s4] sm:$0xff]  ;;  %v401_v62 = vld [vmem:[%s750_s4 + $0x8] sm:$0xff] }
 0x27f   :  { %v499_v41 = vpop.eup %498 }
 0x280   :  { %v364_v42 = vpop.xlane.xlu0 %363  ;;  %v346_v45 = vmul.f32 %v499_v41, %v338_v43 }
 0x281   :  { %v367_v44 = vadd.f32 %v364_v42, %v345_v40 }
 0x283   :  { %370 = vst.msk [vmem:[#allocation2] sm:$0xff] %vm46_vm1, %v367_v44 }
 0x284   :  { %v366_v46 = vpop.xlane.xlu1 %365 }
 0x285   :  { %v368_v47 = vadd.f32 %v366_v46, %v346_v45 }
 0x287   :  { %371 = vst.msk [vmem:[#allocation2 + $0x8] sm:$0xff] %vm46_vm1, %v368_v47 }
 0x288   :  { %v390_v49 = vpop.xlane.xlu1 %389 }
 0x289   :  { %v393_v50 = vadd.f32 %v390_v49, %v374_v48 }
 0x28a   :  { %v402_v51 = vld [vmem:[#allocation2] sm:$0xff] }
 0x28b   :  { %500 = vlog2.f32 %v402_v51  ;;  %395 = vst.msk [vmem:[%s751_s5] sm:$0xff] %vm46_vm1, %v393_v50 }
 0x28c   :  { %v392_v53 = vpop.xlane.xlu1 %391 }
 0x28d   :  { %v394_v54 = vadd.f32 %v392_v53, %v375_v52 }
 0x28e   :  { %v403_v55 = vld [vmem:[#allocation2 + $0x8] sm:$0xff] }
 0x28f   :  { %502 = vlog2.f32 %v403_v55  ;;  %396 = vst.msk [vmem:[%s751_s5 + $0x8] sm:$0xff] %vm46_vm1, %v394_v54 }
 0x298   :  { %v501_v56 = vpop.eup %500 }
 0x299   :  { %v405_v57 = vmul.f32 0.6931472, %v501_v56 }
 0x29b   :  { %v408_v59 = vadd.f32 %v405_v57, %v400_v58 }
 0x29c   :  { %v503_v60 = vpop.eup %502 }
 0x29d   :  { %410 = vst.msk [vmem:[%s750_s4] sm:$0xff] %vm46_vm1, %v408_v59  ;;  %v407_v61 = vmul.f32 0.6931472, %v503_v60 }
 0x29f   :  { %v409_v63 = vadd.f32 %v407_v61, %v401_v62 }
 0x2a1   :  { %411 = vst.msk [vmem:[%s750_s4 + $0x8] sm:$0xff] %vm46_vm1, %v409_v63 }
 0x2a2   :  { %546 = dma.done.wait [#allocation5], 16  }
 0x2a3   :  { %547 = vsyncadd [#allocation5], 4294967280 }
 0x2a4   :  { %437 = vsyncpa [#allocation4], 1 }
 0x2a5   :  { %438 = vsyncpa [#allocation5], 1 }

</bundles_post_ra>
